<compile_context>
chip_gen: v5e
topology: v5e:2x2
jax: 0.10.0
libtpu: 0.0.40
codegen_flags: <defaults>
</compile_context>

<pallas_src>
import functools

import jax
import jax.numpy as jnp
from jax.experimental import pallas as pl
from jax.experimental.pallas import tpu as pltpu

BN_EPS = 1e-5


def _vmem_capacity_bytes():
    """Physical VMEM per TensorCore; safe fallback if the query fails."""
    try:
        info = pltpu.get_tpu_info()
        cap = getattr(info, "vmem_capacity_bytes", None)
        if cap:
            return int(cap)
    except Exception:
        pass
    return 64 * 1024 * 1024          # v7x-sized fallback: safe on all chips


def _pick_tile_rows(H, W, per_px_bytes, budget_bytes):
    """Largest TH with H % TH == 0, (TH*W) % 128 == 0 and the per-step VMEM
    working set within budget; falls back to whole-image tiles (always a
    legal block)."""
    max_px = max(budget_bytes // max(per_px_bytes, 1), W)
    best = None
    for th in range(1, H + 1):
        if H % th == 0 and th * W <= max_px and (th * W) % 128 == 0:
            best = th
    return best if best is not None else H


# ---------------------------------------------------------------------------
# conv3x3 (+ optional fused previous-stage BN+ReLU on the input) + BN stats
# ---------------------------------------------------------------------------
def _make_conv_kernel(TH, W, Cin, Cout, halo_px, fuse_input_bnrelu,
                      use_patch_scratch):
    TPX = TH * W

    def kernel(*refs):
        top_ref, x_ref, bot_ref, w_ref, b_ref = refs[:5]
        idx = 5
        if fuse_input_bnrelu:
            sc_ref, sh_ref = refs[5:7]
            idx = 7
        y_ref, st_ref = refs[idx:idx + 2]
        patch_ref = refs[idx + 2] if use_patch_scratch else None

        h = pl.program_id(1)
        nh = pl.num_programs(1)

        # Tile rows plus one halo row above / below (pre-activation values).
        main = x_ref[...].astype(jnp.float32)                     # (Cin, TPX)
        top = top_ref[...][:, halo_px - W:].astype(jnp.float32)   # (Cin, W)
        bot = bot_ref[...][:, :W].astype(jnp.float32)             # (Cin, W)

        if fuse_input_bnrelu:
            # Previous stage's BatchNorm + ReLU, applied while reading.
            sc = sc_ref[...]                                       # (Cin, 1)
            sh = sh_ref[...]
            main = jnp.maximum(main * sc + sh, 0.0)
            top = jnp.maximum(top * sc + sh, 0.0)
            bot = jnp.maximum(bot * sc + sh, 0.0)

        # Zero-padding rows at the image top / bottom boundaries.
        top = jnp.where(h == 0, 0.0, top)
        bot = jnp.where(h == nh - 1, 0.0, bot)

        # Row-shifted (dy) views of the tile, built from W-aligned windows.
        if TH == 1:
            rows = (top, main, bot)
        else:
            rows = (jnp.concatenate([top, main[:, :TPX - W]], axis=1),   # dy=-1
                    main,                                                # dy= 0
                    jnp.concatenate([main[:, W:], bot], axis=1))         # dy=+1

        # Hoisted left/right image-boundary masks (computed once, reused 3x).
        xcol = jax.lax.broadcasted_iota(jnp.int32, (1, TPX), 1) % W
        left = xcol == 0
        right = xcol == W - 1

        # im2col: dx shifts via XLU roll (wrapped lanes land only on masked
        # positions); taps go straight into the persistent bf16 scratch.
        taps = None if use_patch_scratch else []
        tap = 0
        for r in rows:
            for dx in (-1, 0, 1):
                if dx == -1:
                    t = jnp.where(left, 0.0, pltpu.roll(r, shift=1, axis=1))
                elif dx == 1:
                    t = jnp.where(right, 0.0,
                                  pltpu.roll(r, shift=TPX - 1, axis=1))
                else:
                    t = r
                if use_patch_scratch:
                    patch_ref[tap * Cin:(tap + 1) * Cin, :] = t.astype(jnp.bfloat16)
                else:
                    taps.append(t)
                tap += 1

        if use_patch_scratch:
            patches = patch_ref[...]                           # (9*Cin, TPX) bf16
        else:
            # Tiny-Cin fallback: f32 concat (no packed sublane-offset stores),
            # one cast before the MXU.
            patches = jnp.concatenate(taps, axis=0).astype(jnp.bfloat16)

        # Single MXU contraction, (Cout, 9*Cin) @ (9*Cin, TPX), f32 accumulate.
        acc = jax.lax.dot_general(
            w_ref[...], patches,
            dimension_numbers=(((1,), (0,)), ((), ())),
            preferred_element_type=jnp.float32)
        acc = acc + b_ref[...]                                 # bias (Cout, 1)

        y_ref[...] = acc.astype(y_ref.dtype)                   # bf16 intermediate

        # Per-(n, h) partial BatchNorm statistics (reduced on the host).
        s = jnp.sum(acc, axis=1, keepdims=True)                # (Cout, 1)
        ss = jnp.sum(acc * acc, axis=1, keepdims=True)
        st_ref[...] = jnp.concatenate([s, ss], axis=1)         # (Cout, 2)

    return kernel


def _conv_bn_stats_pass(x_flat, w_t, bias, scale_in, shift_in, *,
                        H, W, TH, vmem_limit):
    """One conv stage: conv3x3+bias (+ fused previous BN+ReLU on the input),
    plus per-(image, row-tile) BatchNorm partial statistics."""
    N, Cin, HW = x_flat.shape
    Cout = w_t.shape[0]
    num_h = H // TH
    tpx = TH * W
    fuse = scale_in is not None
    use_scratch = (Cin % 16 == 0)      # packed-bf16-aligned tap stores

    # Halo blocks: a single W-pixel row when that is a legal lane-dense block,
    # otherwise fall back to fetching the neighbouring tile (toy widths only).
    if W % 128 == 0:
        halo_px = W
        top_map = lambda n, h: (n, 0, jnp.maximum(h * TH - 1, 0))
        bot_map = lambda n, h: (n, 0, jnp.minimum(h * TH + TH, H - 1))
    else:
        halo_px = tpx
        top_map = lambda n, h: (n, 0, jnp.maximum(h - 1, 0))
        bot_map = lambda n, h: (n, 0, jnp.minimum(h + 1, num_h - 1))

    in_specs = [
        pl.BlockSpec((None, Cin, halo_px), top_map),
        pl.BlockSpec((None, Cin, tpx), lambda n, h: (n, 0, h)),
        pl.BlockSpec((None, Cin, halo_px), bot_map),
        pl.BlockSpec((Cout, 9 * Cin), lambda n, h: (0, 0)),
        pl.BlockSpec((Cout, 1), lambda n, h: (0, 0)),
    ]
    inputs = [x_flat, x_flat, x_flat, w_t, bias.reshape(Cout, 1)]
    if fuse:
        in_specs += [pl.BlockSpec((Cin, 1), lambda n, h: (0, 0))] * 2
        inputs += [scale_in.reshape(Cin, 1), shift_in.reshape(Cin, 1)]

    scratch = [pltpu.VMEM((9 * Cin, tpx), jnp.bfloat16)] if use_scratch else []

    kernel = _make_conv_kernel(TH, W, Cin, Cout, halo_px, fuse, use_scratch)
    y, stats = pl.pallas_call(
        kernel,
        out_shape=(jax.ShapeDtypeStruct((N, Cout, HW), jnp.bfloat16),
                   jax.ShapeDtypeStruct((N, num_h, Cout, 2), jnp.float32)),
        grid=(N, num_h),
        in_specs=in_specs,
        out_specs=(pl.BlockSpec((None, Cout, tpx), lambda n, h: (n, 0, h)),
                   pl.BlockSpec((None, None, Cout, 2), lambda n, h: (n, h, 0, 0))),
        scratch_shapes=scratch,
        compiler_params=pltpu.CompilerParams(
            dimension_semantics=("parallel", "parallel"),
            vmem_limit_bytes=vmem_limit),
    )(*inputs)
    return y, stats


# ---------------------------------------------------------------------------
# final BatchNorm-apply + ReLU (lane-dense elementwise pass, large tiles)
# ---------------------------------------------------------------------------
def _bn_relu_kernel(y_ref, sc_ref, sh_ref, o_ref):
    o_ref[...] = jnp.maximum(
        y_ref[...].astype(jnp.float32) * sc_ref[...] + sh_ref[...], 0.0)


def _bn_relu_pass(y_flat, scale, shift, *, H, W, TH, vmem_limit):
    N, C, HW = y_flat.shape
    num_h = H // TH
    tpx = TH * W
    return pl.pallas_call(
        _bn_relu_kernel,
        out_shape=jax.ShapeDtypeStruct((N, C, HW), jnp.float32),
        grid=(N, num_h),
        in_specs=[pl.BlockSpec((None, C, tpx), lambda n, h: (n, 0, h)),
                  pl.BlockSpec((C, 1), lambda n, h: (0, 0)),
                  pl.BlockSpec((C, 1), lambda n, h: (0, 0))],
        out_specs=pl.BlockSpec((None, C, tpx), lambda n, h: (n, 0, h)),
        compiler_params=pltpu.CompilerParams(
            dimension_semantics=("parallel", "parallel"),
            vmem_limit_bytes=vmem_limit),
    )(y_flat, scale.reshape(C, 1), shift.reshape(C, 1))


# ---------------------------------------------------------------------------
# glue
# ---------------------------------------------------------------------------
def _fold_bn(stats, gamma, beta, count):
    """Fold per-(n,h) partial statistics into a per-channel affine.
    (Single-pass E[x^2]-E[x]^2 in f32; a Welford/centered pass would be more
    robust for extreme means, but is well within the required tolerance.)"""
    s = jnp.sum(stats[..., 0], axis=(0, 1))       # (Cout,)
    ss = jnp.sum(stats[..., 1], axis=(0, 1))
    mean = s / count
    var = jnp.maximum(ss / count - mean * mean, 0.0)   # biased (population)
    scale = gamma * jax.lax.rsqrt(var + BN_EPS)
    shift = beta - mean * scale
    return scale, shift


def conv_block_forward(x_nchw, params, *, tile_rows=None):
    """Conv_Block forward. x_nchw: (N, in_dim, H, W) f32 -> (N, out_dim, H, W)."""
    N, _, H, W = x_nchw.shape
    count = jnp.float32(N * H * W)

    vmem_cap = _vmem_capacity_bytes()
    vmem_limit = int(vmem_cap * 0.75)          # generation-aware scoped limit
    vmem_budget = int(vmem_cap * 0.40)         # per-step working-set target

    x = x_nchw.reshape(N, -1, H * W)           # free reshape, channels-major
    scale = shift = None
    for (w, b, gamma, beta) in params:         # w: (3, 3, Cin, Cout)  [HWIO]
        Cin, Cout = w.shape[2], w.shape[3]
        xb = jnp.dtype(x.dtype).itemsize
        # bytes/pixel: input dbuf + halos (~4*Cin*xb) + bf16 out dbuf (4*Cout)
        # + f32 acc (4*Cout) + bf16 patch (18*Cin) + f32 temporaries (16*Cin).
        per_px = Cin * (4 * xb + 34) + 8 * Cout
        TH = tile_rows if tile_rows is not None else _pick_tile_rows(
            H, W, per_px, vmem_budget)
        assert H % TH == 0, "tile_rows must divide H"
        # Host-side weight prep: (Cout, 9*Cin) bf16, K ordered (ky, kx, cin).
        w_t = w.reshape(9 * Cin, Cout).T.astype(jnp.bfloat16)
        x, stats = _conv_bn_stats_pass(x, w_t, b, scale, shift,
                                       H=H, W=W, TH=TH, vmem_limit=vmem_limit)
        scale, shift = _fold_bn(stats, gamma, beta, count)

    C = x.shape[1]
    TH2 = tile_rows if tile_rows is not None else _pick_tile_rows(
        H, W, 16 * C, vmem_budget)
    out = _bn_relu_pass(x, scale, shift, H=H, W=W, TH=TH2, vmem_limit=vmem_limit)
    return out.reshape(N, -1, H, W)


def init_conv_block_params(key, in_dim, out_dim):
    """PyTorch-default-style init; weights kept as (3,3,Cin,Cout) (HWIO).
    (Real PyTorch Conv2d weights (Cout,Cin,3,3) need .transpose(2,3,1,0).)"""
    dim_list = [in_dim, in_dim, out_dim]
    params = []
    for i in range(len(dim_list) - 1):
        c_in, c_out = dim_list[i], dim_list[i + 1]
        key, kw, kb = jax.random.split(key, 3)
        bound = 1.0 / float(c_in * 9) ** 0.5
        w = jax.random.uniform(kw, (3, 3, c_in, c_out), jnp.float32, -bound, bound)
        b = jax.random.uniform(kb, (c_out,), jnp.float32, -bound, bound)
        params.append((w, b, jnp.ones((c_out,), jnp.float32),
                       jnp.zeros((c_out,), jnp.float32)))
    return params


def _reference_forward(x, params):
    """Pure-JAX reference: lax.conv + training-mode BatchNorm + ReLU."""
    for (w, b, gamma, beta) in params:
        y = jax.lax.conv_general_dilated(
            x, w, window_strides=(1, 1), padding=((1, 1), (1, 1)),
            dimension_numbers=("NCHW", "HWIO", "NCHW"),
            precision=jax.lax.Precision.HIGHEST)
        y = y + b[None, :, None, None]
        mean = jnp.mean(y, axis=(0, 2, 3), keepdims=True)
        var = jnp.mean(jnp.square(y - mean), axis=(0, 2, 3), keepdims=True)
        y = (y - mean) * jax.lax.rsqrt(var + BN_EPS)
        y = y * gamma[None, :, None, None] + beta[None, :, None, None]
        x = jnp.maximum(y, 0.0)
    return x


if __name__ == "__main__":
    key = jax.random.PRNGKey(0)
    k_x, k_p = jax.random.split(key)

    in_dim, out_dim = 4, 8
    x = jax.random.normal(k_x, (2, in_dim, 16, 16), jnp.float32)   # NCHW
    params = init_conv_block_params(k_p, in_dim, out_dim)

    # tile_rows=8 -> two row-tiles per image: exercises the halo blocks, the
    # roll-based im2col and the per-(n, h) partial BatchNorm statistics.
    fwd = jax.jit(functools.partial(conv_block_forward, tile_rows=8))
    out = jax.block_until_ready(fwd(x, params))

    assert out.shape == (2, out_dim, 16, 16)
    assert out.dtype == jnp.float32
    assert bool(jnp.all(out >= 0.0))                  # ReLU output
    assert bool(jnp.all(jnp.isfinite(out)))

    ref = _reference_forward(x, params)               # pure-JAX reference
    assert float(jnp.max(jnp.abs(out - ref))) < 5e-2

    print("KERNEL_OK")
</pallas_src>

<mosaic_0001>
module attributes {stable_mosaic.version = 11 : i64} {
  func.func @kernel(%arg0: i32, %arg1: i32, %arg2: memref<1x4x128xf32, #tpu.memory_space<vmem>>, %arg3: memref<1x4x128xf32, #tpu.memory_space<vmem>>, %arg4: memref<1x4x128xf32, #tpu.memory_space<vmem>>, %arg5: memref<4x36xbf16, #tpu.memory_space<vmem>>, %arg6: memref<4x1xf32, #tpu.memory_space<vmem>>, %arg7: memref<1x4x128xbf16, #tpu.memory_space<vmem>>, %arg8: memref<1x1x4x2xf32, #tpu.memory_space<vmem>>) attributes {dimension_semantics = [#tpu.dimension_semantics<parallel>, #tpu.dimension_semantics<parallel>], iteration_bounds = array<i64: 2, 2>, scalar_prefetch = 0 : i64, scratch_operands = 0 : i64, tpu.core_type = #tpu.core_type<tc>, window_params = [{transform_indices = @transform_0, window_bounds = array<i64: 1, 4, 128>}, {transform_indices = @transform_1, window_bounds = array<i64: 1, 4, 128>}, {transform_indices = @transform_2, window_bounds = array<i64: 1, 4, 128>}, {pipeline_mode = #tpu.pipeline_mode<synchronous>, transform_indices = @transform_3, window_bounds = array<i64: 4, 36>}, {pipeline_mode = #tpu.pipeline_mode<synchronous>, transform_indices = @transform_4, window_bounds = array<i64: 4, 1>}, {transform_indices = @transform_5, window_bounds = array<i64: 1, 4, 128>}, {transform_indices = @transform_6, window_bounds = array<i64: 1, 1, 4, 2>}]} {
    %c0 = arith.constant 0 : index
    %c0_0 = arith.constant 0 : index
    %c0_1 = arith.constant 0 : index
    %0 = vector.load %arg3[%c0, %c0_0, %c0_1] : memref<1x4x128xf32, #tpu.memory_space<vmem>>, vector<1x4x128xf32>
    %1 = vector.shape_cast %0 : vector<1x4x128xf32> to vector<4x128xf32>
    %c0_2 = arith.constant 0 : index
    %c0_3 = arith.constant 0 : index
    %c0_4 = arith.constant 0 : index
    %2 = vector.load %arg2[%c0_2, %c0_3, %c0_4] : memref<1x4x128xf32, #tpu.memory_space<vmem>>, vector<1x4x128xf32>
    %3 = vector.shape_cast %2 : vector<1x4x128xf32> to vector<4x128xf32>
    %4 = vector.extract_strided_slice %3 {offsets = [0, 112], sizes = [4, 16], strides = [1, 1]} : vector<4x128xf32> to vector<4x16xf32>
    %c0_5 = arith.constant 0 : index
    %c0_6 = arith.constant 0 : index
    %c0_7 = arith.constant 0 : index
    %5 = vector.load %arg4[%c0_5, %c0_6, %c0_7] : memref<1x4x128xf32, #tpu.memory_space<vmem>>, vector<1x4x128xf32>
    %6 = vector.shape_cast %5 : vector<1x4x128xf32> to vector<4x128xf32>
    %7 = vector.extract_strided_slice %6 {offsets = [0, 0], sizes = [4, 16], strides = [1, 1]} : vector<4x128xf32> to vector<4x16xf32>
    %c0_i32 = arith.constant 0 : i32
    %8 = arith.cmpi eq, %arg1, %c0_i32 : i32
    %cst = arith.constant 0.000000e+00 : f32
    %9 = vector.broadcast %cst : f32 to vector<4x16xf32>
    %10 = arith.select %8, %9, %4 : vector<4x16xf32>
    %c1_i32 = arith.constant 1 : i32
    %11 = arith.cmpi eq, %arg1, %c1_i32 : i32
    %cst_8 = arith.constant 0.000000e+00 : f32
    %12 = vector.broadcast %cst_8 : f32 to vector<4x16xf32>
    %13 = arith.select %11, %12, %7 : vector<4x16xf32>
    %14 = vector.extract_strided_slice %1 {offsets = [0, 0], sizes = [4, 112], strides = [1, 1]} : vector<4x128xf32> to vector<4x112xf32>
    %15 = tpu.concatenate %10, %14 in 1 : vector<4x16xf32>, vector<4x112xf32> -> vector<4x128xf32>
    %16 = vector.extract_strided_slice %1 {offsets = [0, 16], sizes = [4, 112], strides = [1, 1]} : vector<4x128xf32> to vector<4x112xf32>
    %17 = tpu.concatenate %16, %13 in 1 : vector<4x112xf32>, vector<4x16xf32> -> vector<4x128xf32>
    %18 = tpu.iota {dimensions = array<i32: 1>} : vector<1x128xi32>
    %c16_i32 = arith.constant 16 : i32
    %c0_i32_9 = arith.constant 0 : i32
    %19 = arith.cmpi eq, %c16_i32, %c0_i32_9 : i32
    %c1_i32_10 = arith.constant 1 : i32
    %20 = arith.select %19, %c1_i32_10, %c16_i32 : i32
    %21 = vector.broadcast %20 : i32 to vector<1x128xi32>
    %22 = arith.remsi %18, %21 : vector<1x128xi32>
    %c0_i32_11 = arith.constant 0 : i32
    %23 = vector.broadcast %c0_i32_11 : i32 to vector<1x128xi32>
    %24 = arith.cmpi ne, %22, %23 : vector<1x128xi32>
    %c0_i32_12 = arith.constant 0 : i32
    %25 = vector.broadcast %c0_i32_12 : i32 to vector<1x128xi32>
    %26 = arith.cmpi slt, %22, %25 : vector<1x128xi32>
    %c0_i32_13 = arith.constant 0 : i32
    %27 = arith.cmpi slt, %20, %c0_i32_13 : i32
    %28 = vector.broadcast %27 : i1 to vector<1x128xi1>
    %29 = vector.broadcast %28 : vector<1x128xi1> to vector<1x128xi1>
    %30 = arith.xori %26, %29 : vector<1x128xi1>
    %31 = arith.andi %30, %24 : vector<1x128xi1>
    %32 = vector.broadcast %20 : i32 to vector<1x128xi32>
    %33 = arith.addi %22, %32 : vector<1x128xi32>
    %34 = arith.select %31, %33, %22 : vector<1x128xi1>, vector<1x128xi32>
    %c0_i32_14 = arith.constant 0 : i32
    %35 = vector.broadcast %c0_i32_14 : i32 to vector<1x128xi32>
    %36 = arith.cmpi eq, %34, %35 : vector<1x128xi32>
    %c15_i32 = arith.constant 15 : i32
    %37 = vector.broadcast %c15_i32 : i32 to vector<1x128xi32>
    %38 = arith.cmpi eq, %34, %37 : vector<1x128xi32>
    %c1_i32_15 = arith.constant 1 : i32
    %39 = tpu.dynamic_rotate %15 by %c1_i32_15 dim 1 : vector<4x128xf32>, i32 -> vector<4x128xf32>
    %cst_16 = arith.constant 0.000000e+00 : f32
    %40 = vector.shape_cast %36 : vector<1x128xi1> to vector<1x128xi1>
    %41 = vector.broadcast %40 : vector<1x128xi1> to vector<4x128xi1>
    %42 = vector.broadcast %cst_16 : f32 to vector<4x128xf32>
    %43 = arith.select %41, %42, %39 : vector<4x128xi1>, vector<4x128xf32>
    %c127_i32 = arith.constant 127 : i32
    %44 = tpu.dynamic_rotate %15 by %c127_i32 dim 1 : vector<4x128xf32>, i32 -> vector<4x128xf32>
    %cst_17 = arith.constant 0.000000e+00 : f32
    %45 = vector.shape_cast %38 : vector<1x128xi1> to vector<1x128xi1>
    %46 = vector.broadcast %45 : vector<1x128xi1> to vector<4x128xi1>
    %47 = vector.broadcast %cst_17 : f32 to vector<4x128xf32>
    %48 = arith.select %46, %47, %44 : vector<4x128xi1>, vector<4x128xf32>
    %c1_i32_18 = arith.constant 1 : i32
    %49 = tpu.dynamic_rotate %1 by %c1_i32_18 dim 1 : vector<4x128xf32>, i32 -> vector<4x128xf32>
    %cst_19 = arith.constant 0.000000e+00 : f32
    %50 = vector.shape_cast %36 : vector<1x128xi1> to vector<1x128xi1>
    %51 = vector.broadcast %50 : vector<1x128xi1> to vector<4x128xi1>
    %52 = vector.broadcast %cst_19 : f32 to vector<4x128xf32>
    %53 = arith.select %51, %52, %49 : vector<4x128xi1>, vector<4x128xf32>
    %c127_i32_20 = arith.constant 127 : i32
    %54 = tpu.dynamic_rotate %1 by %c127_i32_20 dim 1 : vector<4x128xf32>, i32 -> vector<4x128xf32>
    %cst_21 = arith.constant 0.000000e+00 : f32
    %55 = vector.shape_cast %38 : vector<1x128xi1> to vector<1x128xi1>
    %56 = vector.broadcast %55 : vector<1x128xi1> to vector<4x128xi1>
    %57 = vector.broadcast %cst_21 : f32 to vector<4x128xf32>
    %58 = arith.select %56, %57, %54 : vector<4x128xi1>, vector<4x128xf32>
    %c1_i32_22 = arith.constant 1 : i32
    %59 = tpu.dynamic_rotate %17 by %c1_i32_22 dim 1 : vector<4x128xf32>, i32 -> vector<4x128xf32>
    %cst_23 = arith.constant 0.000000e+00 : f32
    %60 = vector.shape_cast %36 : vector<1x128xi1> to vector<1x128xi1>
    %61 = vector.broadcast %60 : vector<1x128xi1> to vector<4x128xi1>
    %62 = vector.broadcast %cst_23 : f32 to vector<4x128xf32>
    %63 = arith.select %61, %62, %59 : vector<4x128xi1>, vector<4x128xf32>
    %c127_i32_24 = arith.constant 127 : i32
    %64 = tpu.dynamic_rotate %17 by %c127_i32_24 dim 1 : vector<4x128xf32>, i32 -> vector<4x128xf32>
    %cst_25 = arith.constant 0.000000e+00 : f32
    %65 = vector.shape_cast %38 : vector<1x128xi1> to vector<1x128xi1>
    %66 = vector.broadcast %65 : vector<1x128xi1> to vector<4x128xi1>
    %67 = vector.broadcast %cst_25 : f32 to vector<4x128xf32>
    %68 = arith.select %66, %67, %64 : vector<4x128xi1>, vector<4x128xf32>
    %69 = tpu.concatenate %43, %15, %48, %53, %1, %58, %63, %17, %68 in 0 : vector<4x128xf32>, vector<4x128xf32>, vector<4x128xf32>, vector<4x128xf32>, vector<4x128xf32>, vector<4x128xf32>, vector<4x128xf32>, vector<4x128xf32>, vector<4x128xf32> -> vector<36x128xf32>
    %70 = arith.truncf %69 : vector<36x128xf32> to vector<36x128xbf16>
    %c0_26 = arith.constant 0 : index
    %c0_27 = arith.constant 0 : index
    %71 = vector.load %arg5[%c0_26, %c0_27] : memref<4x36xbf16, #tpu.memory_space<vmem>>, vector<4x36xbf16>
    %cst_28 = arith.constant dense<0.000000e+00> : vector<4x128xf32>
    %72 = tpu.matmul %71, %70, %cst_28 {dimension_numbers = #tpu.dot_dimension_numbers<[1], [0], [0], [1], [0, 0, 1, 1], [], []>} : vector<4x36xbf16>, vector<36x128xbf16>, vector<4x128xf32> -> vector<4x128xf32>
    %c0_29 = arith.constant 0 : index
    %c0_30 = arith.constant 0 : index
    %73 = vector.load %arg6[%c0_29, %c0_30] : memref<4x1xf32, #tpu.memory_space<vmem>>, vector<4x1xf32>
    %74 = vector.broadcast %73 : vector<4x1xf32> to vector<4x128xf32>
    %75 = arith.addf %72, %74 : vector<4x128xf32>
    %76 = arith.truncf %75 : vector<4x128xf32> to vector<4x128xbf16>
    %c0_31 = arith.constant 0 : index
    %c0_32 = arith.constant 0 : index
    %c0_33 = arith.constant 0 : index
    %77 = vector.load %arg7[%c0_31, %c0_32, %c0_33] : memref<1x4x128xbf16, #tpu.memory_space<vmem>>, vector<1x4x128xbf16>
    %78 = vector.shape_cast %77 : vector<1x4x128xbf16> to vector<4x128xbf16>
    %79 = vector.shape_cast %76 : vector<4x128xbf16> to vector<1x4x128xbf16>
    tpu.vector_store %arg7[%c0_31, %c0_32, %c0_33], %79 {strides = array<i32>} : memref<1x4x128xbf16, #tpu.memory_space<vmem>>, vector<1x4x128xbf16>,
    %cst_34 = arith.constant dense<0.000000e+00> : vector<4xf32>
    %80 = vector.multi_reduction <add>, %75, %cst_34 [1] : vector<4x128xf32> to vector<4xf32>
    %81 = vector.shape_cast %80 : vector<4xf32> to vector<4x1xf32>
    %82 = arith.mulf %75, %75 : vector<4x128xf32>
    %cst_35 = arith.constant dense<0.000000e+00> : vector<4xf32>
    %83 = vector.multi_reduction <add>, %82, %cst_35 [1] : vector<4x128xf32> to vector<4xf32>
    %84 = vector.shape_cast %83 : vector<4xf32> to vector<4x1xf32>
    %85 = tpu.concatenate %81, %84 in 1 : vector<4x1xf32>, vector<4x1xf32> -> vector<4x2xf32>
    %c0_36 = arith.constant 0 : index
    %c0_37 = arith.constant 0 : index
    %c0_38 = arith.constant 0 : index
    %c0_39 = arith.constant 0 : index
    %86 = vector.load %arg8[%c0_36, %c0_37, %c0_38, %c0_39] : memref<1x1x4x2xf32, #tpu.memory_space<vmem>>, vector<1x1x4x2xf32>
    %87 = vector.shape_cast %86 : vector<1x1x4x2xf32> to vector<4x2xf32>
    %88 = vector.shape_cast %85 : vector<4x2xf32> to vector<1x1x4x2xf32>
    tpu.vector_store %arg8[%c0_36, %c0_37, %c0_38, %c0_39], %88 {strides = array<i32>} : memref<1x1x4x2xf32, #tpu.memory_space<vmem>>, vector<1x1x4x2xf32>,
    return
  }
  func.func @transform_0(%arg0: i32, %arg1: i32) -> (i32, i32, i32) {
    %c1_i32 = arith.constant 1 : i32
    %0 = arith.subi %arg1, %c1_i32 : i32
    %c0_i32 = arith.constant 0 : i32
    %1 = arith.maxsi %0, %c0_i32 : i32
    %c0_i32_0 = arith.constant 0 : i32
    %c0_i32_1 = arith.constant 0 : i32
    return %arg0, %c0_i32_0, %1 : i32, i32, i32
  }
  func.func @transform_1(%arg0: i32, %arg1: i32) -> (i32, i32, i32) {
    %c0_i32 = arith.constant 0 : i32
    %c0_i32_0 = arith.constant 0 : i32
    return %arg0, %c0_i32, %arg1 : i32, i32, i32
  }
  func.func @transform_2(%arg0: i32, %arg1: i32) -> (i32, i32, i32) {
    %c1_i32 = arith.constant 1 : i32
    %0 = arith.addi %arg1, %c1_i32 : i32
    %c1_i32_0 = arith.constant 1 : i32
    %1 = arith.minsi %0, %c1_i32_0 : i32
    %c0_i32 = arith.constant 0 : i32
    %c0_i32_1 = arith.constant 0 : i32
    return %arg0, %c0_i32, %1 : i32, i32, i32
  }
  func.func @transform_3(%arg0: i32, %arg1: i32) -> (i32, i32) {
    %c0_i32 = arith.constant 0 : i32
    %c0_i32_0 = arith.constant 0 : i32
    %c0_i32_1 = arith.constant 0 : i32
    return %c0_i32, %c0_i32_0 : i32, i32
  }
  func.func @transform_4(%arg0: i32, %arg1: i32) -> (i32, i32) {
    %c0_i32 = arith.constant 0 : i32
    %c0_i32_0 = arith.constant 0 : i32
    %c0_i32_1 = arith.constant 0 : i32
    return %c0_i32, %c0_i32_0 : i32, i32
  }
  func.func @transform_5(%arg0: i32, %arg1: i32) -> (i32, i32, i32) {
    %c0_i32 = arith.constant 0 : i32
    %c0_i32_0 = arith.constant 0 : i32
    return %arg0, %c0_i32, %arg1 : i32, i32, i32
  }
  func.func @transform_6(%arg0: i32, %arg1: i32) -> (i32, i32, i32, i32) {
    %c0_i32 = arith.constant 0 : i32
    %c0_i32_0 = arith.constant 0 : i32
    %c0_i32_1 = arith.constant 0 : i32
    return %arg0, %arg1, %c0_i32, %c0_i32_0 : i32, i32, i32, i32
  }
}

module attributes {stable_mosaic.version = 11 : i64} {
  func.func @kernel(%arg0: i32, %arg1: i32, %arg2: memref<1x4x128xbf16, #tpu.memory_space<vmem>>, %arg3: memref<1x4x128xbf16, #tpu.memory_space<vmem>>, %arg4: memref<1x4x128xbf16, #tpu.memory_space<vmem>>, %arg5: memref<8x36xbf16, #tpu.memory_space<vmem>>, %arg6: memref<8x1xf32, #tpu.memory_space<vmem>>, %arg7: memref<4x1xf32, #tpu.memory_space<vmem>>, %arg8: memref<4x1xf32, #tpu.memory_space<vmem>>, %arg9: memref<1x8x128xbf16, #tpu.memory_space<vmem>>, %arg10: memref<1x1x8x2xf32, #tpu.memory_space<vmem>>) attributes {dimension_semantics = [#tpu.dimension_semantics<parallel>, #tpu.dimension_semantics<parallel>], iteration_bounds = array<i64: 2, 2>, scalar_prefetch = 0 : i64, scratch_operands = 0 : i64, tpu.core_type = #tpu.core_type<tc>, window_params = [{transform_indices = @transform_0, window_bounds = array<i64: 1, 4, 128>}, {transform_indices = @transform_1, window_bounds = array<i64: 1, 4, 128>}, {transform_indices = @transform_2, window_bounds = array<i64: 1, 4, 128>}, {pipeline_mode = #tpu.pipeline_mode<synchronous>, transform_indices = @transform_3, window_bounds = array<i64: 8, 36>}, {pipeline_mode = #tpu.pipeline_mode<synchronous>, transform_indices = @transform_4, window_bounds = array<i64: 8, 1>}, {pipeline_mode = #tpu.pipeline_mode<synchronous>, transform_indices = @transform_5, window_bounds = array<i64: 4, 1>}, {pipeline_mode = #tpu.pipeline_mode<synchronous>, transform_indices = @transform_6, window_bounds = array<i64: 4, 1>}, {transform_indices = @transform_7, window_bounds = array<i64: 1, 8, 128>}, {transform_indices = @transform_8, window_bounds = array<i64: 1, 1, 8, 2>}]} {
    %c0 = arith.constant 0 : index
    %c0_0 = arith.constant 0 : index
    %c0_1 = arith.constant 0 : index
    %0 = vector.load %arg3[%c0, %c0_0, %c0_1] : memref<1x4x128xbf16, #tpu.memory_space<vmem>>, vector<1x4x128xbf16>
    %1 = vector.shape_cast %0 : vector<1x4x128xbf16> to vector<4x128xbf16>
    %2 = arith.extf %1 : vector<4x128xbf16> to vector<4x128xf32>
    %c0_2 = arith.constant 0 : index
    %c0_3 = arith.constant 0 : index
    %c0_4 = arith.constant 0 : index
    %3 = vector.load %arg2[%c0_2, %c0_3, %c0_4] : memref<1x4x128xbf16, #tpu.memory_space<vmem>>, vector<1x4x128xbf16>
    %4 = vector.shape_cast %3 : vector<1x4x128xbf16> to vector<4x128xbf16>
    %5 = vector.extract_strided_slice %4 {offsets = [0, 112], sizes = [4, 16], strides = [1, 1]} : vector<4x128xbf16> to vector<4x16xbf16>
    %6 = arith.extf %5 : vector<4x16xbf16> to vector<4x16xf32>
    %c0_5 = arith.constant 0 : index
    %c0_6 = arith.constant 0 : index
    %c0_7 = arith.constant 0 : index
    %7 = vector.load %arg4[%c0_5, %c0_6, %c0_7] : memref<1x4x128xbf16, #tpu.memory_space<vmem>>, vector<1x4x128xbf16>
    %8 = vector.shape_cast %7 : vector<1x4x128xbf16> to vector<4x128xbf16>
    %9 = vector.extract_strided_slice %8 {offsets = [0, 0], sizes = [4, 16], strides = [1, 1]} : vector<4x128xbf16> to vector<4x16xbf16>
    %10 = arith.extf %9 : vector<4x16xbf16> to vector<4x16xf32>
    %c0_8 = arith.constant 0 : index
    %c0_9 = arith.constant 0 : index
    %11 = vector.load %arg7[%c0_8, %c0_9] : memref<4x1xf32, #tpu.memory_space<vmem>>, vector<4x1xf32>
    %c0_10 = arith.constant 0 : index
    %c0_11 = arith.constant 0 : index
    %12 = vector.load %arg8[%c0_10, %c0_11] : memref<4x1xf32, #tpu.memory_space<vmem>>, vector<4x1xf32>
    %13 = vector.broadcast %11 : vector<4x1xf32> to vector<4x128xf32>
    %14 = arith.mulf %2, %13 : vector<4x128xf32>
    %15 = vector.broadcast %12 : vector<4x1xf32> to vector<4x128xf32>
    %16 = arith.addf %14, %15 : vector<4x128xf32>
    %cst = arith.constant 0.000000e+00 : f32
    %17 = vector.broadcast %cst : f32 to vector<4x128xf32>
    %18 = arith.maximumf %16, %17 : vector<4x128xf32>
    %19 = vector.broadcast %11 : vector<4x1xf32> to vector<4x16xf32>
    %20 = arith.mulf %6, %19 : vector<4x16xf32>
    %21 = vector.broadcast %12 : vector<4x1xf32> to vector<4x16xf32>
    %22 = arith.addf %20, %21 : vector<4x16xf32>
    %cst_12 = arith.constant 0.000000e+00 : f32
    %23 = vector.broadcast %cst_12 : f32 to vector<4x16xf32>
    %24 = arith.maximumf %22, %23 : vector<4x16xf32>
    %25 = vector.broadcast %11 : vector<4x1xf32> to vector<4x16xf32>
    %26 = arith.mulf %10, %25 : vector<4x16xf32>
    %27 = vector.broadcast %12 : vector<4x1xf32> to vector<4x16xf32>
    %28 = arith.addf %26, %27 : vector<4x16xf32>
    %cst_13 = arith.constant 0.000000e+00 : f32
    %29 = vector.broadcast %cst_13 : f32 to vector<4x16xf32>
    %30 = arith.maximumf %28, %29 : vector<4x16xf32>
    %c0_i32 = arith.constant 0 : i32
    %31 = arith.cmpi eq, %arg1, %c0_i32 : i32
    %cst_14 = arith.constant 0.000000e+00 : f32
    %32 = vector.broadcast %cst_14 : f32 to vector<4x16xf32>
    %33 = arith.select %31, %32, %24 : vector<4x16xf32>
    %c1_i32 = arith.constant 1 : i32
    %34 = arith.cmpi eq, %arg1, %c1_i32 : i32
    %cst_15 = arith.constant 0.000000e+00 : f32
    %35 = vector.broadcast %cst_15 : f32 to vector<4x16xf32>
    %36 = arith.select %34, %35, %30 : vector<4x16xf32>
    %37 = vector.extract_strided_slice %18 {offsets = [0, 0], sizes = [4, 112], strides = [1, 1]} : vector<4x128xf32> to vector<4x112xf32>
    %38 = tpu.concatenate %33, %37 in 1 : vector<4x16xf32>, vector<4x112xf32> -> vector<4x128xf32>
    %39 = vector.extract_strided_slice %18 {offsets = [0, 16], sizes = [4, 112], strides = [1, 1]} : vector<4x128xf32> to vector<4x112xf32>
    %40 = tpu.concatenate %39, %36 in 1 : vector<4x112xf32>, vector<4x16xf32> -> vector<4x128xf32>
    %41 = tpu.iota {dimensions = array<i32: 1>} : vector<1x128xi32>
    %c16_i32 = arith.constant 16 : i32
    %c0_i32_16 = arith.constant 0 : i32
    %42 = arith.cmpi eq, %c16_i32, %c0_i32_16 : i32
    %c1_i32_17 = arith.constant 1 : i32
    %43 = arith.select %42, %c1_i32_17, %c16_i32 : i32
    %44 = vector.broadcast %43 : i32 to vector<1x128xi32>
    %45 = arith.remsi %41, %44 : vector<1x128xi32>
    %c0_i32_18 = arith.constant 0 : i32
    %46 = vector.broadcast %c0_i32_18 : i32 to vector<1x128xi32>
    %47 = arith.cmpi ne, %45, %46 : vector<1x128xi32>
    %c0_i32_19 = arith.constant 0 : i32
    %48 = vector.broadcast %c0_i32_19 : i32 to vector<1x128xi32>
    %49 = arith.cmpi slt, %45, %48 : vector<1x128xi32>
    %c0_i32_20 = arith.constant 0 : i32
    %50 = arith.cmpi slt, %43, %c0_i32_20 : i32
    %51 = vector.broadcast %50 : i1 to vector<1x128xi1>
    %52 = vector.broadcast %51 : vector<1x128xi1> to vector<1x128xi1>
    %53 = arith.xori %49, %52 : vector<1x128xi1>
    %54 = arith.andi %53, %47 : vector<1x128xi1>
    %55 = vector.broadcast %43 : i32 to vector<1x128xi32>
    %56 = arith.addi %45, %55 : vector<1x128xi32>
    %57 = arith.select %54, %56, %45 : vector<1x128xi1>, vector<1x128xi32>
    %c0_i32_21 = arith.constant 0 : i32
    %58 = vector.broadcast %c0_i32_21 : i32 to vector<1x128xi32>
    %59 = arith.cmpi eq, %57, %58 : vector<1x128xi32>
    %c15_i32 = arith.constant 15 : i32
    %60 = vector.broadcast %c15_i32 : i32 to vector<1x128xi32>
    %61 = arith.cmpi eq, %57, %60 : vector<1x128xi32>
    %c1_i32_22 = arith.constant 1 : i32
    %62 = tpu.dynamic_rotate %38 by %c1_i32_22 dim 1 : vector<4x128xf32>, i32 -> vector<4x128xf32>
    %cst_23 = arith.constant 0.000000e+00 : f32
    %63 = vector.shape_cast %59 : vector<1x128xi1> to vector<1x128xi1>
    %64 = vector.broadcast %63 : vector<1x128xi1> to vector<4x128xi1>
    %65 = vector.broadcast %cst_23 : f32 to vector<4x128xf32>
    %66 = arith.select %64, %65, %62 : vector<4x128xi1>, vector<4x128xf32>
    %c127_i32 = arith.constant 127 : i32
    %67 = tpu.dynamic_rotate %38 by %c127_i32 dim 1 : vector<4x128xf32>, i32 -> vector<4x128xf32>
    %cst_24 = arith.constant 0.000000e+00 : f32
    %68 = vector.shape_cast %61 : vector<1x128xi1> to vector<1x128xi1>
    %69 = vector.broadcast %68 : vector<1x128xi1> to vector<4x128xi1>
    %70 = vector.broadcast %cst_24 : f32 to vector<4x128xf32>
    %71 = arith.select %69, %70, %67 : vector<4x128xi1>, vector<4x128xf32>
    %c1_i32_25 = arith.constant 1 : i32
    %72 = tpu.dynamic_rotate %18 by %c1_i32_25 dim 1 : vector<4x128xf32>, i32 -> vector<4x128xf32>
    %cst_26 = arith.constant 0.000000e+00 : f32
    %73 = vector.shape_cast %59 : vector<1x128xi1> to vector<1x128xi1>
    %74 = vector.broadcast %73 : vector<1x128xi1> to vector<4x128xi1>
    %75 = vector.broadcast %cst_26 : f32 to vector<4x128xf32>
    %76 = arith.select %74, %75, %72 : vector<4x128xi1>, vector<4x128xf32>
    %c127_i32_27 = arith.constant 127 : i32
    %77 = tpu.dynamic_rotate %18 by %c127_i32_27 dim 1 : vector<4x128xf32>, i32 -> vector<4x128xf32>
    %cst_28 = arith.constant 0.000000e+00 : f32
    %78 = vector.shape_cast %61 : vector<1x128xi1> to vector<1x128xi1>
    %79 = vector.broadcast %78 : vector<1x128xi1> to vector<4x128xi1>
    %80 = vector.broadcast %cst_28 : f32 to vector<4x128xf32>
    %81 = arith.select %79, %80, %77 : vector<4x128xi1>, vector<4x128xf32>
    %c1_i32_29 = arith.constant 1 : i32
    %82 = tpu.dynamic_rotate %40 by %c1_i32_29 dim 1 : vector<4x128xf32>, i32 -> vector<4x128xf32>
    %cst_30 = arith.constant 0.000000e+00 : f32
    %83 = vector.shape_cast %59 : vector<1x128xi1> to vector<1x128xi1>
    %84 = vector.broadcast %83 : vector<1x128xi1> to vector<4x128xi1>
    %85 = vector.broadcast %cst_30 : f32 to vector<4x128xf32>
    %86 = arith.select %84, %85, %82 : vector<4x128xi1>, vector<4x128xf32>
    %c127_i32_31 = arith.constant 127 : i32
    %87 = tpu.dynamic_rotate %40 by %c127_i32_31 dim 1 : vector<4x128xf32>, i32 -> vector<4x128xf32>
    %cst_32 = arith.constant 0.000000e+00 : f32
    %88 = vector.shape_cast %61 : vector<1x128xi1> to vector<1x128xi1>
    %89 = vector.broadcast %88 : vector<1x128xi1> to vector<4x128xi1>
    %90 = vector.broadcast %cst_32 : f32 to vector<4x128xf32>
    %91 = arith.select %89, %90, %87 : vector<4x128xi1>, vector<4x128xf32>
    %92 = tpu.concatenate %66, %38, %71, %76, %18, %81, %86, %40, %91 in 0 : vector<4x128xf32>, vector<4x128xf32>, vector<4x128xf32>, vector<4x128xf32>, vector<4x128xf32>, vector<4x128xf32>, vector<4x128xf32>, vector<4x128xf32>, vector<4x128xf32> -> vector<36x128xf32>
    %93 = arith.truncf %92 : vector<36x128xf32> to vector<36x128xbf16>
    %c0_33 = arith.constant 0 : index
    %c0_34 = arith.constant 0 : index
    %94 = vector.load %arg5[%c0_33, %c0_34] : memref<8x36xbf16, #tpu.memory_space<vmem>>, vector<8x36xbf16>
    %cst_35 = arith.constant dense<0.000000e+00> : vector<8x128xf32>
    %95 = tpu.matmul %94, %93, %cst_35 {dimension_numbers = #tpu.dot_dimension_numbers<[1], [0], [0], [1], [0, 0, 1, 1], [], []>} : vector<8x36xbf16>, vector<36x128xbf16>, vector<8x128xf32> -> vector<8x128xf32>
    %c0_36 = arith.constant 0 : index
    %c0_37 = arith.constant 0 : index
    %96 = vector.load %arg6[%c0_36, %c0_37] : memref<8x1xf32, #tpu.memory_space<vmem>>, vector<8x1xf32>
    %97 = vector.broadcast %96 : vector<8x1xf32> to vector<8x128xf32>
    %98 = arith.addf %95, %97 : vector<8x128xf32>
    %99 = arith.truncf %98 : vector<8x128xf32> to vector<8x128xbf16>
    %c0_38 = arith.constant 0 : index
    %c0_39 = arith.constant 0 : index
    %c0_40 = arith.constant 0 : index
    %100 = vector.load %arg9[%c0_38, %c0_39, %c0_40] : memref<1x8x128xbf16, #tpu.memory_space<vmem>>, vector<1x8x128xbf16>
    %101 = vector.shape_cast %100 : vector<1x8x128xbf16> to vector<8x128xbf16>
    %102 = vector.shape_cast %99 : vector<8x128xbf16> to vector<1x8x128xbf16>
    tpu.vector_store %arg9[%c0_38, %c0_39, %c0_40], %102 {strides = array<i32>} : memref<1x8x128xbf16, #tpu.memory_space<vmem>>, vector<1x8x128xbf16>,
    %cst_41 = arith.constant dense<0.000000e+00> : vector<8xf32>
    %103 = vector.multi_reduction <add>, %98, %cst_41 [1] : vector<8x128xf32> to vector<8xf32>
    %104 = vector.shape_cast %103 : vector<8xf32> to vector<8x1xf32>
    %105 = arith.mulf %98, %98 : vector<8x128xf32>
    %cst_42 = arith.constant dense<0.000000e+00> : vector<8xf32>
    %106 = vector.multi_reduction <add>, %105, %cst_42 [1] : vector<8x128xf32> to vector<8xf32>
    %107 = vector.shape_cast %106 : vector<8xf32> to vector<8x1xf32>
    %108 = tpu.concatenate %104, %107 in 1 : vector<8x1xf32>, vector<8x1xf32> -> vector<8x2xf32>
    %c0_43 = arith.constant 0 : index
    %c0_44 = arith.constant 0 : index
    %c0_45 = arith.constant 0 : index
    %c0_46 = arith.constant 0 : index
    %109 = vector.load %arg10[%c0_43, %c0_44, %c0_45, %c0_46] : memref<1x1x8x2xf32, #tpu.memory_space<vmem>>, vector<1x1x8x2xf32>
    %110 = vector.shape_cast %109 : vector<1x1x8x2xf32> to vector<8x2xf32>
    %111 = vector.shape_cast %108 : vector<8x2xf32> to vector<1x1x8x2xf32>
    tpu.vector_store %arg10[%c0_43, %c0_44, %c0_45, %c0_46], %111 {strides = array<i32>} : memref<1x1x8x2xf32, #tpu.memory_space<vmem>>, vector<1x1x8x2xf32>,
    return
  }
  func.func @transform_0(%arg0: i32, %arg1: i32) -> (i32, i32, i32) {
    %c1_i32 = arith.constant 1 : i32
    %0 = arith.subi %arg1, %c1_i32 : i32
    %c0_i32 = arith.constant 0 : i32
    %1 = arith.maxsi %0, %c0_i32 : i32
    %c0_i32_0 = arith.constant 0 : i32
    %c0_i32_1 = arith.constant 0 : i32
    return %arg0, %c0_i32_0, %1 : i32, i32, i32
  }
  func.func @transform_1(%arg0: i32, %arg1: i32) -> (i32, i32, i32) {
    %c0_i32 = arith.constant 0 : i32
    %c0_i32_0 = arith.constant 0 : i32
    return %arg0, %c0_i32, %arg1 : i32, i32, i32
  }
  func.func @transform_2(%arg0: i32, %arg1: i32) -> (i32, i32, i32) {
    %c1_i32 = arith.constant 1 : i32
    %0 = arith.addi %arg1, %c1_i32 : i32
    %c1_i32_0 = arith.constant 1 : i32
    %1 = arith.minsi %0, %c1_i32_0 : i32
    %c0_i32 = arith.constant 0 : i32
    %c0_i32_1 = arith.constant 0 : i32
    return %arg0, %c0_i32, %1 : i32, i32, i32
  }
  func.func @transform_3(%arg0: i32, %arg1: i32) -> (i32, i32) {
    %c0_i32 = arith.constant 0 : i32
    %c0_i32_0 = arith.constant 0 : i32
    %c0_i32_1 = arith.constant 0 : i32
    return %c0_i32, %c0_i32_0 : i32, i32
  }
  func.func @transform_4(%arg0: i32, %arg1: i32) -> (i32, i32) {
    %c0_i32 = arith.constant 0 : i32
    %c0_i32_0 = arith.constant 0 : i32
    %c0_i32_1 = arith.constant 0 : i32
    return %c0_i32, %c0_i32_0 : i32, i32
  }
  func.func @transform_5(%arg0: i32, %arg1: i32) -> (i32, i32) {
    %c0_i32 = arith.constant 0 : i32
    %c0_i32_0 = arith.constant 0 : i32
    %c0_i32_1 = arith.constant 0 : i32
    return %c0_i32, %c0_i32_0 : i32, i32
  }
  func.func @transform_6(%arg0: i32, %arg1: i32) -> (i32, i32) {
    %c0_i32 = arith.constant 0 : i32
    %c0_i32_0 = arith.constant 0 : i32
    %c0_i32_1 = arith.constant 0 : i32
    return %c0_i32, %c0_i32_0 : i32, i32
  }
  func.func @transform_7(%arg0: i32, %arg1: i32) -> (i32, i32, i32) {
    %c0_i32 = arith.constant 0 : i32
    %c0_i32_0 = arith.constant 0 : i32
    return %arg0, %c0_i32, %arg1 : i32, i32, i32
  }
  func.func @transform_8(%arg0: i32, %arg1: i32) -> (i32, i32, i32, i32) {
    %c0_i32 = arith.constant 0 : i32
    %c0_i32_0 = arith.constant 0 : i32
    %c0_i32_1 = arith.constant 0 : i32
    return %arg0, %arg1, %c0_i32, %c0_i32_0 : i32, i32, i32, i32
  }
}

module attributes {stable_mosaic.version = 11 : i64} {
  func.func @_bn_relu_kernel(%arg0: i32, %arg1: i32, %arg2: memref<1x8x128xbf16, #tpu.memory_space<vmem>>, %arg3: memref<8x1xf32, #tpu.memory_space<vmem>>, %arg4: memref<8x1xf32, #tpu.memory_space<vmem>>, %arg5: memref<1x8x128xf32, #tpu.memory_space<vmem>>) attributes {dimension_semantics = [#tpu.dimension_semantics<parallel>, #tpu.dimension_semantics<parallel>], iteration_bounds = array<i64: 2, 2>, scalar_prefetch = 0 : i64, scratch_operands = 0 : i64, tpu.core_type = #tpu.core_type<tc>, window_params = [{transform_indices = @transform_0, window_bounds = array<i64: 1, 8, 128>}, {pipeline_mode = #tpu.pipeline_mode<synchronous>, transform_indices = @transform_1, window_bounds = array<i64: 8, 1>}, {pipeline_mode = #tpu.pipeline_mode<synchronous>, transform_indices = @transform_2, window_bounds = array<i64: 8, 1>}, {transform_indices = @transform_3, window_bounds = array<i64: 1, 8, 128>}]} {
    %c0 = arith.constant 0 : index
    %c0_0 = arith.constant 0 : index
    %c0_1 = arith.constant 0 : index
    %0 = vector.load %arg2[%c0, %c0_0, %c0_1] : memref<1x8x128xbf16, #tpu.memory_space<vmem>>, vector<1x8x128xbf16>
    %1 = vector.shape_cast %0 : vector<1x8x128xbf16> to vector<8x128xbf16>
    %2 = arith.extf %1 : vector<8x128xbf16> to vector<8x128xf32>
    %c0_2 = arith.constant 0 : index
    %c0_3 = arith.constant 0 : index
    %3 = vector.load %arg3[%c0_2, %c0_3] : memref<8x1xf32, #tpu.memory_space<vmem>>, vector<8x1xf32>
    %4 = vector.broadcast %3 : vector<8x1xf32> to vector<8x128xf32>
    %5 = arith.mulf %2, %4 : vector<8x128xf32>
    %c0_4 = arith.constant 0 : index
    %c0_5 = arith.constant 0 : index
    %6 = vector.load %arg4[%c0_4, %c0_5] : memref<8x1xf32, #tpu.memory_space<vmem>>, vector<8x1xf32>
    %7 = vector.broadcast %6 : vector<8x1xf32> to vector<8x128xf32>
    %8 = arith.addf %5, %7 : vector<8x128xf32>
    %cst = arith.constant 0.000000e+00 : f32
    %9 = vector.broadcast %cst : f32 to vector<8x128xf32>
    %10 = arith.maximumf %8, %9 : vector<8x128xf32>
    %c0_6 = arith.constant 0 : index
    %c0_7 = arith.constant 0 : index
    %c0_8 = arith.constant 0 : index
    %11 = vector.load %arg5[%c0_6, %c0_7, %c0_8] : memref<1x8x128xf32, #tpu.memory_space<vmem>>, vector<1x8x128xf32>
    %12 = vector.shape_cast %11 : vector<1x8x128xf32> to vector<8x128xf32>
    %13 = vector.shape_cast %10 : vector<8x128xf32> to vector<1x8x128xf32>
    tpu.vector_store %arg5[%c0_6, %c0_7, %c0_8], %13 {strides = array<i32>} : memref<1x8x128xf32, #tpu.memory_space<vmem>>, vector<1x8x128xf32>,
    return
  }
  func.func @transform_0(%arg0: i32, %arg1: i32) -> (i32, i32, i32) {
    %c0_i32 = arith.constant 0 : i32
    %c0_i32_0 = arith.constant 0 : i32
    return %arg0, %c0_i32, %arg1 : i32, i32, i32
  }
  func.func @transform_1(%arg0: i32, %arg1: i32) -> (i32, i32) {
    %c0_i32 = arith.constant 0 : i32
    %c0_i32_0 = arith.constant 0 : i32
    %c0_i32_1 = arith.constant 0 : i32
    return %c0_i32, %c0_i32_0 : i32, i32
  }
  func.func @transform_2(%arg0: i32, %arg1: i32) -> (i32, i32) {
    %c0_i32 = arith.constant 0 : i32
    %c0_i32_0 = arith.constant 0 : i32
    %c0_i32_1 = arith.constant 0 : i32
    return %c0_i32, %c0_i32_0 : i32, i32
  }
  func.func @transform_3(%arg0: i32, %arg1: i32) -> (i32, i32, i32) {
    %c0_i32 = arith.constant 0 : i32
    %c0_i32_0 = arith.constant 0 : i32
    return %arg0, %c0_i32, %arg1 : i32, i32, i32
  }
}

</mosaic_0001>

<bundles_post_ra>
// kernel: conv_block_forward.5
= control target key start
LH: loop header
LB: loop body
LE: loop exit
PB: predicated region body
PF: predicated region fallthrough
CT: control target
= control target key end

     0   :  { %s420_s12 = smov 0   ;;  %s422_s13 = smov 0   ;;  %s477_s0 = inlined_call_operand.vmem [shape: bf16[2,8,256], index: 0, kind: input, shape index: {}]   ;;  %s478_s1 = inlined_call_operand.vmem [shape: f32[8,1], index: 1, kind: input, shape index: {}]   ;;  %s479_s2 = inlined_call_operand.vmem [shape: f32[8,1], index: 2, kind: input, shape index: {}]   ;;  %s480_s3 = inlined_call_operand.vmem [shape: f32[2,8,256], index: 3, kind: output, shape index: {}]  }
   0x1   :  { %s424_s14 = smov 0   ;;  %s426_s15 = smov 0  }
   0x2   :  { %s428_s16 = smov 0  }
   0x3 LB: > { %s22_s17 = sadd.s32 1, %s389_s14  ;;  %s25_s18 = sadd.s32 1, %s393_s15  ;;  %s397_s16 = sphi %s428_s16, %s13_s16   ;;  %s393_s15 = sphi %s426_s15, %s484_s15   ;;  %s389_s14 = sphi %s424_s14, %s483_s14   ;;  %s385_s13 = sphi %s422_s13, %s482_s13   ;;  %s381_s12 = sphi %s420_s12, %s481_s12  }
   0x4   : > { %p23_p0 = scmp.ge.s32.totalorder %s22_s17, 2  ;;  %p310_p1 = scmp.ge.s32.totalorder %s397_s16, 1 }
   0x5   : > { %p156_p2 = scmp.lt.s32.totalorder %s397_s16, 5 }
   0x6   : > { %s486_s17 = smov (%p23_p0, %s22_s17), 0  ;;  %s488_s18 = smov (!%p23_p0, %s25_s18), %s393_s15 }
   0x7   : > { %p157_p3 = pnand %p310_p1, %p156_p2  ;;  %p27_p4 = scmp.ge.s32.totalorder %s488_s18, 2 }
   0x8   : > { %p186_p5 = scmp.lt.s32.totalorder (!%p157_p3), %s385_s13, 1  ;;  %p188_p6 = scmp.lt.s32.totalorder (!%p157_p3), %s381_s12, 1 }
   0x9   : > { %s490_s18 = smov (%p27_p4, %s488_s18), 0  ;;  %160 = sbr.rel (%p157_p3) target bundleno = 144 (0x90), region = 32 }
   0xe   : > { %v204_v0 = vld [vmem:[%s478_s1] sm:$0xff]  ;;  %v399_v1 = vmov 0   ;;  %s492_s13 = smov (!%p186_p5, %s385_s13), 1  ;;  %s494_s12 = smov (!%p188_p6, %s381_s12), 1 }
   0xf   : > { %358 = vset.pattern.permute.xlu0 %v399_v1  ;;  %v211_v2 = vld [vmem:[%s479_s2] sm:$0xff]  ;;  %s311_s23 = sshll.u32 %s492_s13, 1 }
  0x10   : > { %207 = vperm.xlu0 %358, %v204_v0   ;;  %s191_s24 = sadd.s32 %s311_s23, %s494_s12 }
  0x11   : > { %s312_s25 = sshll.u32 %s191_s24, 2  ;;  %s314_s29 = sshll.u32 %s191_s24, 3 }
  0x12   : > { %s193_s28 = scalar_lea.vmem %s477_s0, %s312_s25  ;;  %s201_s5 = scalar_lea.vmem %s480_s3, %s314_s29 }
  0x13   : > { %v202_v4 = vld [vmem:[%s193_s28] sm:$0xf] }
  0x14   : > { %v203_v5 = vunpack.c.l.bf16 %v202_v4 }
  0x18   : > { %214 = vperm.xlu0 %358, %v211_v2  }
  0x82   : > { %v208_v3 = vpop.permute.xlu0 %207 }
  0x83   : > { %v210_v6 = vmul.f32 %v208_v3, %v203_v5 }
  0x8a   : > { %v215_v7 = vpop.permute.xlu0 %214 }
  0x8b   : > { %v217_v8 = vadd.f32 %v215_v7, %v210_v6 }
  0x8d   : > { %v218_v9 = vmax.f32 %v217_v8, 0.0 }
  0x8f   : > { %219 = vst [vmem:[%s201_s5] sm:$0xff] %v218_v9 }
  0x90 PF: > { %s13_s16 = sadd.s32 1, %s397_s16   ;;  %s481_s12 = smov %s389_s14 }
  0x91   : > { %p10_p7 = scmp.ge.s32.totalorder %s13_s16, 6   ;;  %s482_s13 = smov %s393_s15 }
  0x92   : > { %s483_s14 = smov %s486_s17  ;;  %s484_s15 = smov %s490_s18 }
  0x93   :  { %12 = sbr.rel (!%p10_p7) target bundleno = 3 (0x3), region = 62 }

// kernel: conv_block_forward.3
= control target key start
LH: loop header
LB: loop body
LE: loop exit
PB: predicated region body
PF: predicated region fallthrough
CT: control target
= control target key end

     0   :  { %s886_s21 = smov 0   ;;  %s888_s22 = smov 0   ;;  %s990_s0 = inlined_call_operand.vmem [shape: f32[2,4,256], index: 0, kind: input, shape index: {}, may-alias: {0,1,2}]   ;;  %s991_s1 = inlined_call_operand.vmem [shape: f32[2,4,256], index: 1, kind: input, shape index: {}, may-alias: {0,1,2}]   ;;  %s992_s2 = inlined_call_operand.vmem [shape: f32[2,4,256], index: 2, kind: input, shape index: {}, may-alias: {0,1,2}]   ;;  %s993_s3 = inlined_call_operand.vmem [shape: bf16[4,36], index: 3, kind: input, shape index: {}]   ;;  %s994_s4 = inlined_call_operand.vmem [shape: f32[4,1], index: 4, kind: input, shape index: {}]   ;;  %s995_s5 = inlined_call_operand.vmem [shape: bf16[2,4,256], index: 5, kind: output, shape index: {0}]   ;;  %s996_s6 = inlined_call_operand.vmem [shape: f32[2,2,4,2], index: 6, kind: output, shape index: {1}]  }
   0x1   :  { %s890_s23 = smov 0   ;;  %s892_s24 = smov 0  }
   0x2   :  { %s894_s25 = smov 0  }
   0x3 LB: > { %s26_s26 = sadd.s32 1, %s836_s23  ;;  %s29_s27 = sadd.s32 1, %s840_s24  ;;  %s844_s25 = sphi %s894_s25, %s17_s25   ;;  %s840_s24 = sphi %s892_s24, %s1002_s24   ;;  %s836_s23 = sphi %s890_s23, %s1001_s23   ;;  %s832_s22 = sphi %s888_s22, %s1000_s22   ;;  %s828_s21 = sphi %s886_s21, %s999_s21  }
   0x4   : > { %p27_p0 = scmp.ge.s32.totalorder %s26_s26, 2  ;;  %p715_p1 = scmp.ge.s32.totalorder %s844_s25, 1 }
   0x5   : > { %p290_p2 = scmp.lt.s32.totalorder %s844_s25, 5 }
   0x6   : > { %s1004_s26 = smov (%p27_p0, %s26_s26), 0  ;;  %s1006_s27 = smov (!%p27_p0, %s29_s27), %s840_s24 }
   0x7   : > { %p291_p3 = pnand %p715_p1, %p290_p2  ;;  %p31_p4 = scmp.ge.s32.totalorder %s1006_s27, 2 }
   0x8   : > { %p359_p5 = scmp.lt.s32.totalorder (!%p291_p3), %s832_s22, 1  ;;  %p372_p6 = scmp.lt.s32.totalorder (!%p291_p3), %s828_s21, 1 }
   0x9   : > { %s1008_s27 = smov (%p31_p4, %s1006_s27), 0  ;;  %294 = sbr.rel (%p291_p3) target bundleno = 532 (0x214), region = 40 }
   0xa   : > { %s378_s28 = sadd.s32 (!%p291_p3), 1, %s828_s21  ;;  %p417_p8 = scmp.eq.s32.totalorder (!%p291_p3), %s828_s21, 1 }
   0xb   : > { %p379_p7 = scmp.lt.s32.totalorder (!%p291_p3), %s378_s28, 1  ;;  %s716_s9 = sadd.s32 (!%p291_p3), 4294967295, %s828_s21 }
   0xc   : > { %p357_p9 = scmp.gt.s32.totalorder (!%p291_p3), %s716_s9, 0  ;;  %p717_p10 = scmp.lt.s32.totalorder (!%p291_p3), %s716_s9, 1 }
   0xd   : > { %p412_p11 = scmp.eq.s32.totalorder (!%p291_p3), %s828_s21, 0  ;;  %s847_s11 = smov (!%p291_p3), 16  }
   0xe   : > { %s1010_s22 = smov (!%p359_p5, %s832_s22), 1  ;;  %s1012_s28 = smov (!%p379_p7, %s378_s28), 1  ;;  %vm439_vm2 = vcmask 916480   ;;  %vm430_vm3 = vcmask 130048   ;;  %v441_v18 = vlaneseq  ;;  %v500_v19 = vld [vmem:[%s994_s4] sm:$0xf] }
   0xf   : > { %s373_s29 = scalar_select %p372_p6, %s828_s21, 1  ;;  %v850_v20 = vmov 0   ;;  %vm510_vm5 = vcmask 1041408   ;;  %vm491_vm7 = vcmask 1043456   ;;  %v499_v50 = vld [vmem:[%s993_s3] sm:$0x3] }
  0x10   : > { %s722_s30 = sshll.u32 %s1010_s22, 1  ;;  %s1014_s28 = smov (!%p379_p7, %s1012_s28), 1  ;;  %805 = vset.pattern.permute.xlu0 %v850_v20  ;;  %v442_v21 = vand.u32 127, %v441_v18  ;;  %vm506_vm8 = vcmask 293888   ;;  %vm536_vm9 = vcmask 7168   ;;  %vm538_vm10 = vcmask 11264  }
  0x11   : > { %s921_s7 = sadd.s32 %s722_s30, %s373_s29  ;;  %s386_s15 = sadd.s32 %s722_s30, %s1014_s28 }
  0x12   : > { %s725_s8 = sshll.u32 %s921_s7, 2  ;;  %s730_s16 = sshll.u32 %s386_s15, 2  ;;  %v447_v22 = vand.u32 15, %v442_v21 }
  0x13   : > { %s377_s12 = scalar_lea.vmem %s991_s1, %s725_s8  ;;  %s388_s19 = scalar_lea.vmem %s992_s2, %s730_s16 }
  0x14   : > { %s418_s13 = scalar_select %p417_p8, 1, 0  ;;  %v935_v1 = vld [vmem:[%s377_s12] sm:$0xf]  ;;  %vm946_vm4 = vcmp.eq.s32.totalorder %v447_v22, 15  ;;  %vm455_vm6 = vcmp.eq.s32.totalorder %v447_v22, 0 }
  0x15   : > { %s358_s14 = scalar_select %p357_p9, %s716_s9, 0  ;;  %v411_v2 = vld [vmem:[%s388_s19] sm:$0xf] }
  0x16   : > { %v419_v0 = vstv %s418_s13  ;;  %s413_s20 = scalar_select %p412_p11, 1, 0 }
  0x17   : > { %vm420_vm0 = vcmp.eq.s32.totalorder %v419_v0, 1  ;;  %s1016_s14 = smov (!%p717_p10, %s358_s14), 1  ;;  %s846_s28 = smov 112  }
  0x18   : > { %v421_v3 = vsel %vm420_vm0, 0.0, %v411_v2  ;;  %s364_s22 = sadd.s32 %s1016_s14, %s722_s30  ;;  %v414_v5 = vstv %s413_s20  ;;  %s848_s30 = smov 127  }
  0x19   : > { %v785_v4 = vpack.i.bf16 %v421_v3, %v935_v1  ;;  %s723_s29 = sshll.u32 %s364_s22, 2  ;;  %vm415_vm1 = vcmp.eq.s32.totalorder %v414_v5, 1  ;;  %s849_s12 = smov 1  }
  0x1a   : > { %s366_s21 = scalar_lea.vmem %s990_s0, %s723_s29  ;;  %s732_s17 = sshll.u32 %s921_s7, 1 }
  0x1b   : > { %786 = vrot.lane.b32.xlu0 %v785_v4, %s846_s28  ;;  %v410_v6 = vld [vmem:[%s366_s21] sm:$0xf]  ;;  %s399_s20 = scalar_lea.vmem %s995_s5, %s732_s17  ;;  %s407_s28 = scalar_lea.vmem %s996_s6, %s725_s8 }
  0x1c   : > { %v416_v7 = vsel %vm415_vm1, 0.0, %v410_v6 }
  0x1d   : > { %v790_v8 = vpack.i.bf16 %v935_v1, %v416_v7 }
  0x23   : > { %791 = vrot.lane.b32.xlu0 %v790_v8, %s847_s11 }
  0x2b   : > { %503 = vperm.xlu0 %805, %v500_v19  }
  0x8d   : > { %v787_v9 = vpop.permute.xlu0 %786 }
  0x8e   : > { %v789_v10 = vunpack.i.h.bf16 %v787_v9  ;;  %v788_v11 = vunpack.i.l.bf16 %v787_v9 }
  0x90   : > { %v440_v12 = vsel %vm439_vm2, %v788_v11, %v789_v10 }
  0x91   : > { %v795_v13 = vpack.i.bf16 %v935_v1, %v440_v12  ;;  %v489_v36 = vrot.slane %v440_v12, 4 }
  0x93   : > { %796 = vrot.lane.b32.xlu1 %v795_v13, %s848_s30 }
  0x95   : > { %v792_v14 = vpop.permute.xlu0 %791 }
  0x96   : > { %v794_v15 = vunpack.i.h.bf16 %v792_v14  ;;  %v793_v16 = vunpack.i.l.bf16 %v792_v14 }
  0x98   : > { %v431_v17 = vsel %vm430_vm3, %v793_v16, %v794_v15 }
  0x99   : > { %457 = vrot.lane.b32.xlu2 %v431_v17, %s849_s12  ;;  %v480_v46 = vrot.slane %v431_v17, 4 }
  0x9b   : > { %801 = vrot.lane.b32.xlu1 %v795_v13, %s849_s12 }
  0x9d   : > { %v504_v51 = vpop.permute.xlu0 %503 }
  0xa1   : > { %462 = vrot.lane.b32.xlu2 %v431_v17, %s848_s30 }
  0xf3   : > { %v458_v27 = vpop.permute.xlu2 %457 }
  0xf4   : > { %v461_v43 = vsel %vm455_vm6, 0.0, %v458_v27 }
  0xf5   : > { %v492_v48 = vsel %vm491_vm7, %v461_v43, %v480_v46 }
  0xfb   : > { %v463_v37 = vpop.permute.xlu2 %462 }
  0xfc   : > { %v466_v44 = vsel %vm946_vm4, 0.0, %v463_v37 }
 0x105   : > { %v797_v23 = vpop.permute.xlu1 %796 }
 0x106   : > { %v799_v25 = vunpack.i.h.bf16 %v797_v23  ;;  %v798_v26 = vunpack.i.l.bf16 %v797_v23 }
 0x108   : > { %v478_v28 = vsel %vm946_vm4, 0.0, %v798_v26  ;;  %v472_v30 = vsel %vm946_vm4, 0.0, %v799_v25 }
 0x109   : > { %v498_v29 = vpack.c.bf16 %v478_v28, %v478_v28  ;;  %v486_v32 = vrot.slane %v472_v30, 4 }
 0x10b   : > { %v512_v31 = vsel %vm510_vm5, %v498_v29, 0  ;;  %v494_v41 = vsel %vm491_vm7, %v935_v1, %v486_v32 }
 0x10c   : > { %519 = vmatpush.bf16.msra.mxu0 %v512_v31 }
 0x10d   : > { %v802_v33 = vpop.permute.xlu1 %801 }
 0x10e   : > { %v804_v34 = vunpack.i.h.bf16 %v802_v33  ;;  %v803_v35 = vunpack.i.l.bf16 %v802_v33 }
 0x110   : > { %v469_v38 = vsel %vm455_vm6, 0.0, %v804_v34  ;;  %v475_v39 = vsel %vm455_vm6, 0.0, %v803_v35 }
 0x111   : > { %v483_v40 = vrot.slane %v469_v38, 4  ;;  %v495_v42 = vsel %vm491_vm7, %v475_v39, %v489_v36 }
 0x112   : > { %v497_v45 = vpack.c.bf16 %v495_v42, %v494_v41 }
 0x113   : > { %v493_v47 = vsel %vm491_vm7, %v466_v44, %v483_v40 }
 0x114   : > { %520 = vmatpush.bf16.msra.mxu0 %v497_v45  ;;  %v496_v49 = vpack.c.bf16 %v493_v47, %v492_v48 }
 0x118   : > { %521 = vmatpush.bf16.msra.mxu0 %v496_v49 }
 0x11b   : > { %735 = vmatmul.msk.bf16.vlgmr.msra.gmra.mxu0 %vm506_vm8, %v499_v50 }
 0x198   : > { %v523_v52 = vpop.f32.mrf.mxu0 }
 0x199   : > { %v524_v53 = vadd.f32 %v523_v52, %v504_v51 }
 0x19b   : > { %v527_v54 = vpack.c.bf16 %v524_v53, %v524_v53  ;;  %v529_v55 = vsel %vm491_vm7, %v524_v53, 0.0  ;;  %v532_v56 = vmul.f32 %v524_v53, %v524_v53 }
 0x19c   : > { %530 = vadd.xlane.f32.xlu1 %v529_v55 }
 0x19d   : > { %528 = vst [vmem:[%s399_s20] sm:$0x3] %v527_v54  ;;  %v533_v57 = vsel %vm491_vm7, %v532_v56, 0.0 }
 0x19e   : > { %534 = vadd.xlane.f32.xlu2 %v533_v57 }
 0x1a0   : > { %v525_v58 = vpop.f32.mrf.mxu0 }
 0x20f   : > { %v531_v59 = vpop.xlane.xlu1 %530 }
 0x211   : > { %v535_v60 = vpop.xlane.xlu2 %534 }
 0x212   : > { %v537_v61 = vsel %vm536_vm9, %v531_v59, %v535_v60 }
 0x213   : > { %539 = vst.msk [vmem:[%s407_s28] sm:$0xf] %vm538_vm10, %v537_v61 }
 0x214 PF: > { %s17_s25 = sadd.s32 1, %s844_s25   ;;  %s999_s21 = smov %s836_s23 }
 0x215   : > { %p14_p12 = scmp.ge.s32.totalorder %s17_s25, 6   ;;  %s1000_s22 = smov %s840_s24 }
 0x216   : > { %s1001_s23 = smov %s1004_s26  ;;  %s1002_s24 = smov %s1008_s27 }
 0x217   :  { %16 = sbr.rel (!%p14_p12) target bundleno = 3 (0x3), region = 88 }

// kernel: conv_block_forward.4
= control target key start
LH: loop header
LB: loop body
LE: loop exit
PB: predicated region body
PF: predicated region fallthrough
CT: control target
= control target key end

     0   :  { %s981_s27 = smov 0   ;;  %s983_s28 = smov 0   ;;  %s1104_s0 = inlined_call_operand.vmem [shape: bf16[2,4,256], index: 0, kind: input, shape index: {}, may-alias: {0,1,2}]   ;;  %s1105_s1 = inlined_call_operand.vmem [shape: bf16[2,4,256], index: 1, kind: input, shape index: {}, may-alias: {0,1,2}]   ;;  %s1106_s2 = inlined_call_operand.vmem [shape: bf16[2,4,256], index: 2, kind: input, shape index: {}, may-alias: {0,1,2}]   ;;  %s1107_s3 = inlined_call_operand.vmem [shape: bf16[8,36], index: 3, kind: input, shape index: {}]   ;;  %s1108_s4 = inlined_call_operand.vmem [shape: f32[8,1], index: 4, kind: input, shape index: {}]   ;;  %s1109_s5 = inlined_call_operand.vmem [shape: f32[4,1], index: 5, kind: input, shape index: {}]   ;;  %s1110_s6 = inlined_call_operand.vmem [shape: f32[4,1], index: 6, kind: input, shape index: {}]   ;;  %s1111_s7 = inlined_call_operand.vmem [shape: bf16[2,8,256], index: 7, kind: output, shape index: {0}]   ;;  %s1112_s8 = inlined_call_operand.vmem [shape: f32[2,2,8,2], index: 8, kind: output, shape index: {1}]  }
   0x1   :  { %s985_s29 = smov 0   ;;  %s987_s30 = smov 0  }
   0x2   :  { %s989_s9 = smov 0  }
   0x3 LB: > { %s28_s10 = sadd.s32 1, %s921_s29  ;;  %s31_s11 = sadd.s32 1, %s925_s30  ;;  %s929_s9 = sphi %s989_s9, %s19_s9   ;;  %s925_s30 = sphi %s987_s30, %s1121_s30   ;;  %s921_s29 = sphi %s985_s29, %s1120_s29   ;;  %s917_s28 = sphi %s983_s28, %s1119_s28   ;;  %s913_s27 = sphi %s981_s27, %s1118_s27  }
   0x4   : > { %p29_p0 = scmp.ge.s32.totalorder %s28_s10, 2  ;;  %p799_p1 = scmp.ge.s32.totalorder %s929_s9, 1 }
   0x5   : > { %p340_p2 = scmp.lt.s32.totalorder %s929_s9, 5 }
   0x6   : > { %s1123_s10 = smov (%p29_p0, %s28_s10), 0  ;;  %s1125_s11 = smov (!%p29_p0, %s31_s11), %s925_s30 }
   0x7   : > { %p341_p3 = pnand %p799_p1, %p340_p2  ;;  %p33_p4 = scmp.ge.s32.totalorder %s1125_s11, 2 }
   0x8   : > { %s800_s16 = sadd.s32 (!%p341_p3), 4294967295, %s913_s27  ;;  %p413_p6 = scmp.lt.s32.totalorder (!%p341_p3), %s917_s28, 1 }
   0x9   : > { %s1127_s11 = smov (%p33_p4, %s1125_s11), 0  ;;  %344 = sbr.rel (%p341_p3) target bundleno = 674 (0x2a2), region = 48 }
   0xa   : > { %p411_p5 = scmp.gt.s32.totalorder (!%p341_p3), %s800_s16, 0  ;;  %p801_p7 = scmp.lt.s32.totalorder (!%p341_p3), %s800_s16, 1 }
   0xb   : > { %p426_p8 = scmp.lt.s32.totalorder (!%p341_p3), %s913_s27, 1  ;;  %s432_s21 = sadd.s32 (!%p341_p3), 1, %s913_s27 }
   0xc   : > { %p1028_p9 = scmp.lt.s32.totalorder (!%p341_p3), %s432_s21, 1  ;;  %p490_p10 = scmp.eq.s32.totalorder (!%p341_p3), %s913_s27, 0 }
   0xd   : > { %p495_p11 = scmp.eq.s32.totalorder (!%p341_p3), %s913_s27, 1  ;;  %s933_s23 = smov (!%p341_p3), 16  }
   0xe   : > { %v469_v0 = vld [vmem:[%s1109_s5] sm:$0xf]  ;;  %v931_v1 = vmov 0   ;;  %s1129_s16 = smov (!%p411_p5, %s800_s16), 0  ;;  %s1131_s28 = smov (!%p413_p6, %s917_s28), 1  ;;  %vm525_vm2 = vcmask 916480   ;;  %v527_v39 = vlaneseq }
   0xf   : > { %869 = vset.pattern.permute.xlu0 %v931_v1  ;;  %890 = vset.pattern.permute.xlu2 %v931_v1  ;;  %v470_v2 = vld [vmem:[%s1110_s6] sm:$0xf]  ;;  %s1133_s16 = smov (!%p801_p7, %s1129_s16), 1  ;;  %s806_s17 = sshll.u32 %s1131_s28, 1  ;;  %vm512_vm3 = vcmask 130048   ;;  %vm596_vm5 = vcmask 1041408  }
  0x10   : > { %473 = vperm.xlu0 %869, %v469_v0   ;;  %s418_s18 = sadd.s32 %s1133_s16, %s806_s17  ;;  %s1135_s21 = smov (!%p1028_p9, %s432_s21), 1  ;;  %v528_v40 = vand.u32 127, %v527_v39  ;;  %v586_v50 = vld [vmem:[%s1108_s4] sm:$0xff]  ;;  %vm577_vm7 = vcmask 1043456   ;;  %vm592_vm8 = vcmask 293888   ;;  %vm620_vm9 = vcmask 7168  }
  0x11   : > { %s807_s19 = sshll.u32 %s418_s18, 1  ;;  %s1137_s21 = smov (!%p1028_p9, %s1135_s21), 1  ;;  %vm622_vm10 = vcmask 15360  }
  0x12   : > { %s427_s20 = scalar_select %p426_p8, %s913_s27, 1  ;;  %v533_v41 = vand.u32 15, %v528_v40 }
  0x13   : > { %s420_s24 = scalar_lea.vmem %s1104_s0, %s807_s19  ;;  %s440_s16 = sadd.s32 %s806_s17, %s1137_s21 }
  0x14   : > { %s1026_s25 = sadd.s32 %s806_s17, %s427_s20  ;;  %v465_v4 = vld [vmem:[%s420_s24] sm:$0x3]  ;;  %s814_s18 = sshll.u32 %s440_s16, 1  ;;  %vm1050_vm4 = vcmp.eq.s32.totalorder %v533_v41, 15  ;;  %vm1061_vm6 = vcmp.eq.s32.totalorder %v533_v41, 0 }
  0x15   : > { %s809_s28 = sshll.u32 %s1026_s25, 1  ;;  %v466_v5 = vunpack.c.l.bf16 %v465_v4  ;;  %s442_s22 = scalar_lea.vmem %s1106_s2, %s814_s18 }
  0x16   : > { %s491_s12 = scalar_select %p490_p10, 1, 0  ;;  %v467_v16 = vld [vmem:[%s442_s22] sm:$0x3] }
  0x17   : > { %s431_s15 = scalar_lea.vmem %s1105_s1, %s809_s28  ;;  %v468_v19 = vunpack.c.l.bf16 %v467_v16  ;;  %s932_s21 = smov 112  }
  0x18   : > { %479 = vperm.xlu0 %869, %v470_v2   ;;  %v463_v6 = vld [vmem:[%s431_s15] sm:$0x3]  ;;  %v492_v8 = vstv %s491_s12  ;;  %s496_s17 = scalar_select %p495_p11, 1, 0 }
  0x19   : > { %v464_v11 = vunpack.c.l.bf16 %v463_v6  ;;  %vm493_vm0 = vcmp.eq.s32.totalorder %v492_v8, 1  ;;  %s934_s27 = smov 127   ;;  %s935_s24 = smov 1  }
  0x1a   : > { %v497_v23 = vstv %s496_s17  ;;  %s816_s14 = sshll.u32 %s1026_s25, 2  ;;  %s818_s19 = sshll.u32 %s1026_s25, 3 }
  0x1b   : > { %vm498_vm1 = vcmp.eq.s32.totalorder %v497_v23, 1  ;;  %s453_s18 = scalar_lea.vmem %s1111_s7, %s816_s14  ;;  %s461_s17 = scalar_lea.vmem %s1112_s8, %s818_s19 }
  0x82   : > { %v474_v3 = vpop.permute.xlu0 %473 }
  0x83   : > { %v484_v7 = vmul.f32 %v474_v3, %v466_v5  ;;  %v476_v14 = vmul.f32 %v474_v3, %v464_v11  ;;  %v487_v20 = vmul.f32 %v474_v3, %v468_v19 }
  0x8a   : > { %v480_v9 = vpop.permute.xlu0 %479 }
  0x8b   : > { %v485_v10 = vadd.f32 %v484_v7, %v480_v9  ;;  %v482_v15 = vadd.f32 %v480_v9, %v476_v14  ;;  %v488_v21 = vadd.f32 %v487_v20, %v480_v9  ;;  %v585_v7 = vld [vmem:[%s1107_s3] sm:$0xf] }
  0x8d   : > { %v486_v12 = vmax.f32 %v485_v10, 0.0  ;;  %v1044_v17 = vmax.f32 %v482_v15, 0.0  ;;  %v489_v24 = vmax.f32 %v488_v21, 0.0 }
  0x8f   : > { %v494_v13 = vsel %vm493_vm0, 0.0, %v486_v12  ;;  %v499_v25 = vsel %vm498_vm1, 0.0, %v489_v24 }
  0x90   : > { %501 = vst [vmem:[#allocation1] ss:$2 sm:$0xff] %v494_v13 }
  0x97   : > { %v502_v18 = vld.sshfl [vmem:[#allocation1] sm:$0xff pattern:$0x75316420] }
  0x98   : > { %507 = vst [vmem:[#allocation1] ss:$2 sm:$0xff] %v1044_v17 }
  0x9f   : > { %v508_v22 = vld.sshfl [vmem:[#allocation1] sm:$0xff pattern:$0x75316420] }
  0xa0   : > { %514 = vst [vmem:[#allocation1] ss:$2 sm:$0xff] %v1044_v17  ;;  %v875_v29 = vpack.i.bf16 %v508_v22, %v502_v18 }
  0xa7   : > { %v515_v26 = vld.sshfl [vmem:[#allocation1] sm:$0xff pattern:$0x75316420] }
  0xa8   : > { %520 = vst [vmem:[#allocation1] ss:$2 sm:$0xff] %v499_v25 }
  0xaf   : > { %v521_v27 = vld.sshfl [vmem:[#allocation1] sm:$0xff pattern:$0x75316420] }
  0xb0   : > { %v870_v28 = vpack.i.bf16 %v521_v27, %v515_v26 }
  0xb2   : > { %871 = vrot.lane.b32.xlu1 %v870_v28, %s932_s21 }
  0xba   : > { %876 = vrot.lane.b32.xlu1 %v875_v29, %s933_s23 }
 0x124   : > { %v872_v30 = vpop.permute.xlu1 %871 }
 0x125   : > { %v874_v31 = vunpack.i.h.bf16 %v872_v30  ;;  %v873_v32 = vunpack.i.l.bf16 %v872_v30 }
 0x127   : > { %v526_v33 = vsel %vm525_vm2, %v873_v32, %v874_v31 }
 0x128   : > { %v880_v34 = vpack.i.bf16 %v1044_v17, %v526_v33  ;;  %v575_v55 = vrot.slane %v526_v33, 4 }
 0x12a   : > { %881 = vrot.lane.b32.xlu2 %v880_v34, %s934_s27 }
 0x12c   : > { %v877_v35 = vpop.permute.xlu1 %876 }
 0x12d   : > { %v879_v36 = vunpack.i.h.bf16 %v877_v35  ;;  %v878_v37 = vunpack.i.l.bf16 %v877_v35 }
 0x12f   : > { %v513_v38 = vsel %vm512_vm3, %v878_v37, %v879_v36 }
 0x130   : > { %548 = vrot.lane.b32.xlu1 %v513_v38, %s934_s27  ;;  %543 = vrot.lane.b32.xlu0 %v513_v38, %s935_s24  ;;  %v566_v62 = vrot.slane %v513_v38, 4 }
 0x132   : > { %886 = vrot.lane.b32.xlu2 %v880_v34, %s935_s24 }
 0x13a   : > { %589 = vperm.xlu2 %890, %v586_v50  }
 0x184   : > { %v882_v43 = vpop.permute.xlu2 %881 }
 0x185   : > { %v884_v44 = vunpack.i.h.bf16 %v882_v43  ;;  %v883_v45 = vunpack.i.l.bf16 %v882_v43 }
 0x187   : > { %v564_v46 = vsel %vm1050_vm4, 0.0, %v883_v45  ;;  %v558_v48 = vsel %vm1050_vm4, 0.0, %v884_v44 }
 0x188   : > { %v584_v47 = vpack.c.bf16 %v564_v46, %v564_v46  ;;  %v572_v51 = vrot.slane %v558_v48, 4 }
 0x18a   : > { %v598_v49 = vsel %vm596_vm5, %v584_v47, 0  ;;  %v580_v57 = vsel %vm577_vm7, %v1044_v17, %v572_v51 }
 0x18b   : > { %605 = vmatpush.bf16.msra.mxu0 %v598_v49 }
 0x18c   : > { %v887_v53 = vpop.permute.xlu2 %886 }
 0x18d   : > { %v888_v54 = vunpack.i.l.bf16 %v887_v53  ;;  %v889_v60 = vunpack.i.h.bf16 %v887_v53 }
 0x18f   : > { %v561_v56 = vsel %vm1061_vm6, 0.0, %v888_v54  ;;  %v555_v61 = vsel %vm1061_vm6, 0.0, %v889_v60 }
 0x190   : > { %v581_v58 = vsel %vm577_vm7, %v561_v56, %v575_v55  ;;  %v569_v63 = vrot.slane %v555_v61, 4 }
 0x191   : > { %v583_v59 = vpack.c.bf16 %v581_v58, %v580_v57 }
 0x193   : > { %606 = vmatpush.bf16.msra.mxu0 %v583_v59 }
 0x194   : > { %v590_v8 = vpop.permute.xlu2 %589 }
 0x1a2   : > { %v549_v0 = vpop.permute.xlu1 %548  ;;  %v544_v1 = vpop.permute.xlu0 %543 }
 0x1a3   : > { %v552_v2 = vsel %vm1050_vm4, 0.0, %v549_v0  ;;  %v547_v3 = vsel %vm1061_vm6, 0.0, %v544_v1 }
 0x1a4   : > { %v578_v4 = vsel %vm577_vm7, %v547_v3, %v566_v62  ;;  %v579_v5 = vsel %vm577_vm7, %v552_v2, %v569_v63 }
 0x1a5   : > { %v582_v6 = vpack.c.bf16 %v579_v5, %v578_v4 }
 0x1a7   : > { %607 = vmatpush.bf16.msra.mxu0 %v582_v6 }
 0x1aa   : > { %819 = vmatmul.msk.bf16.vlgmr.msra.gmra.mxu0 %vm592_vm8, %v585_v7 }
 0x227   : > { %v609_v9 = vpop.f32.mrf.mxu0 }
 0x228   : > { %v610_v10 = vadd.f32 %v609_v9, %v590_v8 }
 0x22a   : > { %v613_v11 = vpack.c.bf16 %v610_v10, %v610_v10  ;;  %615 = vadd.xlane.f32.xlu0 %v610_v10  ;;  %v617_v12 = vmul.f32 %v610_v10, %v610_v10 }
 0x22c   : > { %614 = vst [vmem:[%s453_s18] sm:$0xf] %v613_v11  ;;  %618 = vadd.xlane.f32.xlu1 %v617_v12 }
 0x22f   : > { %v611_v13 = vpop.f32.mrf.mxu0 }
 0x29d   : > { %v616_v14 = vpop.xlane.xlu0 %615 }
 0x29f   : > { %v619_v15 = vpop.xlane.xlu1 %618 }
 0x2a0   : > { %v621_v16 = vsel %vm620_vm9, %v616_v14, %v619_v15 }
 0x2a1   : > { %623 = vst.msk [vmem:[%s461_s17] sm:$0xff] %vm622_vm10, %v621_v16 }
 0x2a2 PF: > { %s19_s9 = sadd.s32 1, %s929_s9   ;;  %s1118_s27 = smov %s921_s29 }
 0x2a3   : > { %p16_p12 = scmp.ge.s32.totalorder %s19_s9, 6   ;;  %s1119_s28 = smov %s925_s30 }
 0x2a4   : > { %s1120_s29 = smov %s1123_s10  ;;  %s1121_s30 = smov %s1127_s11 }
 0x2a5   :  { %18 = sbr.rel (!%p16_p12) target bundleno = 3 (0x3), region = 96 }

</bundles_post_ra>
